<compile_context>
chip_gen: v6e
topology: v6e:2x2x1
jax: 0.10.0
libtpu: 0.0.40
codegen_flags: <defaults>
</compile_context>

<pallas_src>
import functools

import jax
import jax.numpy as jnp
from jax.experimental import pallas as pl
from jax.experimental.pallas import tpu as pltpu


def _layernorm1d_kernel(x_ref, scale_ref, bias_ref, o_ref, *, eps, approx):
    # x_ref: (block_rows, d_hid); scale/bias: (1, d_hid)
    x = x_ref[...].astype(jnp.float32)
    d = x.shape[-1]

    # Single-pass moments: both cross-lane reductions issue back-to-back into
    # the XLU (no full-tile VPU subtract in between).
    s1 = jnp.sum(x, axis=-1, keepdims=True)
    s2 = jnp.sum(x * x, axis=-1, keepdims=True)
    mu = s1 * jnp.float32(1.0 / d)
    # Unbiased variance (torch.std default, ddof=1). Clamp tiny negative
    # values that can arise from cancellation in the single-pass form.
    var = (s2 - s1 * mu) * jnp.float32(1.0 / (d - 1))
    var = jnp.maximum(var, jnp.float32(0.0))
    sigma = jnp.sqrt(var)

    # (sigma + eps) denominator, exactly as in the PyTorch module. The divide
    # becomes an EUP reciprocal + VPU multiply.
    inv = pl.reciprocal(sigma + jnp.float32(eps), approx=approx)
    ln = (x - mu) * inv
    out = ln * scale_ref[...].astype(jnp.float32) + bias_ref[...].astype(jnp.float32)
    o_ref[...] = out.astype(o_ref.dtype)


def _pick_block_rows(rows, d_hid, itemsize):
    """Pick a row tile: big enough to saturate HBM, small enough for VMEM."""
    # Sublane pack size per dtype (f32:8, bf16:16, int8/fp8:32).
    pack = {1: 32, 2: 16}.get(itemsize, 8)
    # VMEM budget for pipelined tiles: 2 (in+out) x 2 (double buffer) I/O
    # buffers at the I/O dtype plus ~4 f32-tile-sized compute temporaries.
    budget_bytes = 24 * 1024 * 1024
    bytes_per_row = d_hid * (4 * itemsize + 4 * 4)
    max_rows = max(pack, (budget_bytes // bytes_per_row) // pack * pack)
    block_rows = min(1024, max_rows)

    # Never larger than the (sublane-padded) row count.
    rows_padded = ((rows + pack - 1) // pack) * pack
    block_rows = min(block_rows, rows_padded)

    # Prefer >= 2 grid steps: keeps the DMA/compute pipeline alive and lets
    # the 'parallel' row axis shard across v7x's two TensorCores.
    if block_rows >= rows_padded and rows_padded >= 2 * pack:
        half = (rows_padded + 1) // 2
        block_rows = ((half + pack - 1) // pack) * pack
    return block_rows


def layer_norm_1d(x, scale, bias, *, eps=0.001, block_rows=None,
                  approx_reciprocal=True):
    """Pallas implementation of LayerNorm1d.forward.

    x: (..., d_hid). Mirrors the PyTorch quirk: if x.shape[1] == 1, return x.
    Note: d_hid == 1 divides by zero in the unbiased variance, exactly like
    the PyTorch original.
    """
    if x.ndim >= 2 and x.shape[1] == 1:
        return x

    d_hid = x.shape[-1]
    orig_shape = x.shape
    x2 = x.reshape(-1, d_hid)
    rows = x2.shape[0]

    itemsize = jnp.dtype(x.dtype).itemsize
    if block_rows is None:
        block_rows = _pick_block_rows(rows, d_hid, itemsize)

    scale2 = scale.reshape(1, d_hid)
    bias2 = bias.reshape(1, d_hid)

    grid = (pl.cdiv(rows, block_rows),)  # masked partial tail tile if needed
    out = pl.pallas_call(
        functools.partial(_layernorm1d_kernel, eps=eps, approx=approx_reciprocal),
        out_shape=jax.ShapeDtypeStruct((rows, d_hid), x.dtype),
        grid_spec=pltpu.PrefetchScalarGridSpec(
            num_scalar_prefetch=0,
            grid=grid,
            in_specs=[
                pl.BlockSpec((block_rows, d_hid), lambda i: (i, 0)),
                pl.BlockSpec((1, d_hid), lambda i: (0, 0)),
                pl.BlockSpec((1, d_hid), lambda i: (0, 0)),
            ],
            out_specs=pl.BlockSpec((block_rows, d_hid), lambda i: (i, 0)),
        ),
        compiler_params=pltpu.CompilerParams(
            dimension_semantics=("parallel",),
            # Large row tiles need more than v5e's 16 MiB default scoped VMEM;
            # 48 MiB is still comfortably under v7x's 64 MiB physical VMEM.
            vmem_limit_bytes=48 * 1024 * 1024,
        ),
    )(x2, scale2, bias2)
    return out.reshape(orig_shape)


def _reference(x, scale, bias, eps=0.001):
    if x.shape[1] == 1:
        return x
    x = x.astype(jnp.float32)
    mu = jnp.mean(x, axis=-1, keepdims=True)
    sigma = jnp.std(x, axis=-1, keepdims=True, ddof=1)  # torch.std -> unbiased
    ln = (x - mu) / (sigma + eps)
    return ln * scale + bias


if __name__ == "__main__":
    key = jax.random.PRNGKey(0)
    batch, seq, d_hid = 2, 8, 32

    # Deterministic parameter init matching nn.Parameter(torch.ones/zeros(d_hid))
    scale = jnp.ones((d_hid,), dtype=jnp.float32)
    bias = jnp.zeros((d_hid,), dtype=jnp.float32)

    x = jax.random.normal(key, (batch, seq, d_hid), dtype=jnp.float32)

    # Fast path (EUP approx reciprocal): validated at approx-reciprocal tolerance.
    out = layer_norm_1d(x, scale, bias, eps=0.001)
    out = jax.block_until_ready(out)
    ref = _reference(x, scale, bias, eps=0.001)
    assert out.shape == x.shape and out.dtype == x.dtype
    assert jnp.allclose(out, ref, atol=1e-2, rtol=1e-2), "approx path mismatch"

    # Exact-reciprocal path: tight tolerance validates the single-pass moments.
    out_exact = layer_norm_1d(x, scale, bias, eps=0.001, approx_reciprocal=False)
    out_exact = jax.block_until_ready(out_exact)
    assert jnp.allclose(out_exact, ref, atol=1e-5, rtol=1e-5), "exact path mismatch"

    # Non-divisible row count exercises the masked partial tail tile.
    key2 = jax.random.PRNGKey(0)
    x2 = jax.random.normal(key2, (3, 7, d_hid), dtype=jnp.float32)
    out2 = jax.block_until_ready(
        layer_norm_1d(x2, scale, bias, eps=0.001, approx_reciprocal=False))
    ref2 = _reference(x2, scale, bias, eps=0.001)
    assert jnp.allclose(out2, ref2, atol=1e-5, rtol=1e-5), "tail tile mismatch"

    print("KERNEL_OK")
</pallas_src>

<mosaic_0001>
module attributes {stable_mosaic.version = 11 : i64} {
  func.func @_layernorm1d_kernel(%arg0: i32, %arg1: memref<8x32xf32, #tpu.memory_space<vmem>>, %arg2: memref<1x32xf32, #tpu.memory_space<vmem>>, %arg3: memref<1x32xf32, #tpu.memory_space<vmem>>, %arg4: memref<8x32xf32, #tpu.memory_space<vmem>>) attributes {dimension_semantics = [#tpu.dimension_semantics<parallel>], iteration_bounds = array<i64: 2>, scalar_prefetch = 0 : i64, scratch_operands = 0 : i64, tpu.core_type = #tpu.core_type<tc>, window_params = [{transform_indices = @transform_0, window_bounds = array<i64: 8, 32>}, {pipeline_mode = #tpu.pipeline_mode<synchronous>, transform_indices = @transform_1, window_bounds = array<i64: 1, 32>}, {pipeline_mode = #tpu.pipeline_mode<synchronous>, transform_indices = @transform_2, window_bounds = array<i64: 1, 32>}, {transform_indices = @transform_3, window_bounds = array<i64: 8, 32>}]} {
    %c0 = arith.constant 0 : index
    %c0_0 = arith.constant 0 : index
    %0 = vector.load %arg1[%c0, %c0_0] : memref<8x32xf32, #tpu.memory_space<vmem>>, vector<8x32xf32>
    %cst = arith.constant dense<0.000000e+00> : vector<8xf32>
    %1 = vector.multi_reduction <add>, %0, %cst [1] : vector<8x32xf32> to vector<8xf32>
    %2 = vector.shape_cast %1 : vector<8xf32> to vector<8x1xf32>
    %3 = arith.mulf %0, %0 : vector<8x32xf32>
    %cst_1 = arith.constant dense<0.000000e+00> : vector<8xf32>
    %4 = vector.multi_reduction <add>, %3, %cst_1 [1] : vector<8x32xf32> to vector<8xf32>
    %5 = vector.shape_cast %4 : vector<8xf32> to vector<8x1xf32>
    %cst_2 = arith.constant 3.125000e-02 : f32
    %6 = vector.broadcast %cst_2 : f32 to vector<8x1xf32>
    %7 = arith.mulf %2, %6 : vector<8x1xf32>
    %8 = arith.mulf %2, %7 : vector<8x1xf32>
    %9 = arith.subf %5, %8 : vector<8x1xf32>
    %cst_3 = arith.constant 0.0322580636 : f32
    %10 = vector.broadcast %cst_3 : f32 to vector<8x1xf32>
    %11 = arith.mulf %9, %10 : vector<8x1xf32>
    %cst_4 = arith.constant 0.000000e+00 : f32
    %12 = vector.broadcast %cst_4 : f32 to vector<8x1xf32>
    %13 = arith.maximumf %11, %12 : vector<8x1xf32>
    %14 = math.sqrt %13 : vector<8x1xf32>
    %cst_5 = arith.constant 1.000000e-03 : f32
    %15 = vector.broadcast %cst_5 : f32 to vector<8x1xf32>
    %16 = arith.addf %14, %15 : vector<8x1xf32>
    %17 = tpu.reciprocal %16 {approx = true} : vector<8x1xf32> -> vector<8x1xf32>
    %18 = vector.broadcast %7 : vector<8x1xf32> to vector<8x32xf32>
    %19 = arith.subf %0, %18 : vector<8x32xf32>
    %20 = vector.broadcast %17 : vector<8x1xf32> to vector<8x32xf32>
    %21 = arith.mulf %19, %20 : vector<8x32xf32>
    %c0_6 = arith.constant 0 : index
    %c0_7 = arith.constant 0 : index
    %22 = vector.load %arg2[%c0_6, %c0_7] : memref<1x32xf32, #tpu.memory_space<vmem>>, vector<1x32xf32>
    %23 = vector.broadcast %22 : vector<1x32xf32> to vector<8x32xf32>
    %24 = arith.mulf %21, %23 : vector<8x32xf32>
    %c0_8 = arith.constant 0 : index
    %c0_9 = arith.constant 0 : index
    %25 = vector.load %arg3[%c0_8, %c0_9] : memref<1x32xf32, #tpu.memory_space<vmem>>, vector<1x32xf32>
    %26 = vector.broadcast %25 : vector<1x32xf32> to vector<8x32xf32>
    %27 = arith.addf %24, %26 : vector<8x32xf32>
    %c0_10 = arith.constant 0 : index
    %c0_11 = arith.constant 0 : index
    %28 = vector.load %arg4[%c0_10, %c0_11] : memref<8x32xf32, #tpu.memory_space<vmem>>, vector<8x32xf32>
    tpu.vector_store %arg4[%c0_10, %c0_11], %27 {strides = array<i32>} : memref<8x32xf32, #tpu.memory_space<vmem>>, vector<8x32xf32>,
    return
  }
  func.func @transform_0(%arg0: i32) -> (i32, i32) {
    %c0_i32 = arith.constant 0 : i32
    %c0_i32_0 = arith.constant 0 : i32
    return %arg0, %c0_i32 : i32, i32
  }
  func.func @transform_1(%arg0: i32) -> (i32, i32) {
    %c0_i32 = arith.constant 0 : i32
    %c0_i32_0 = arith.constant 0 : i32
    %c0_i32_1 = arith.constant 0 : i32
    return %c0_i32, %c0_i32_0 : i32, i32
  }
  func.func @transform_2(%arg0: i32) -> (i32, i32) {
    %c0_i32 = arith.constant 0 : i32
    %c0_i32_0 = arith.constant 0 : i32
    %c0_i32_1 = arith.constant 0 : i32
    return %c0_i32, %c0_i32_0 : i32, i32
  }
  func.func @transform_3(%arg0: i32) -> (i32, i32) {
    %c0_i32 = arith.constant 0 : i32
    %c0_i32_0 = arith.constant 0 : i32
    return %arg0, %c0_i32 : i32, i32
  }
}

</mosaic_0001>

<bundles_post_ra>
// kernel: tpu_custom_call.1
= control target key start
LH: loop header
LB: loop body
LE: loop exit
PB: predicated region body
PF: predicated region fallthrough
CT: control target
= control target key end

     0   :  { %8 = vsyncpa [#allocation3], 0  ;;  %s646_s0 = inlined_call_operand.hbm [shape: f32[16,32], index: 0, kind: input, shape index: {}]   ;;  %s647_s1 = inlined_call_operand.vmem [shape: f32[1,32], index: 1, kind: input, shape index: {}]   ;;  %s648_s2 = inlined_call_operand.vmem [shape: f32[1,32], index: 2, kind: input, shape index: {}]   ;;  %s649_s3 = inlined_call_operand.hbm [shape: f32[16,32], index: 3, kind: output, shape index: {}]  }
   0x1   :  { %10 = vsyncpa [#allocation3 + $0x1], 0 }
   0x2   :  { %11 = vsyncpa [#allocation4], 0 }
   0x3   :  { %13 = vsyncpa [#allocation4 + $0x1], 0  ;;  %s492_s12 = smov 0   ;;  %s494_s13 = smov 0  }
   0x4   :  { %s496_s14 = smov 0   ;;  %s498_s15 = smov 0  }
   0x5 LB: > { %s513_s16 = sadd.s32 4294967295, %s468_s15   ;;  %s312_s17 = sadd.s32 4294967294, %s468_s15   ;;  %s468_s15 = sphi %s498_s15, %s666_s15   ;;  %s464_s14 = sphi %s496_s14, %s665_s14   ;;  %s460_s13 = sphi %s494_s13, %s664_s13   ;;  %s456_s12 = sphi %s492_s12, %s663_s12  }
   0x6   : > { %s517_s18 = sadd.s32 1, %s468_s15   ;;  %s26_s19 = sadd.s32 1, %s464_s14 }
   0x7   : > { %s23_s20 = ssub.s32 %s468_s15, %s517_s18  ;;  %p33_p0 = scmp.ne.s32.totalorder %s464_s14, %s460_s13 }
   0x8   : > { %p24_p1 = scmp.eq.s32.totalorder %s23_s20, 0  ;;  %p34_p2 = scmp.eq.s32.totalorder %s468_s15, 0 }
   0x9   : > { %p39_p3 = scmp.ne.s32.totalorder %s460_s13, %s456_s12  ;;  %p40_p4 = scmp.eq.s32.totalorder %s513_s16, 0 }
   0xa   : > { %s529_s21 = scalar_select %p24_p1, %s464_s14, %s26_s19  }
   0xb   : > { %p531_p5 = por %p34_p2, %p33_p0  ;;  %p535_p6 = por %p40_p4, %p39_p3 }
   0xc   : > { %p105_p7 = scmp.eq.s32.totalorder %s513_s16, 1  ;;  %p111_p8 = scmp.eq.s32.totalorder %s312_s17, 1 }
   0xd   : > { %s653_s23 = scalar_select %p535_p6, 1, 0 }
   0xe   : > { %p338_p10 = scmp.lt.s32.totalorder %s468_s15, 2  ;;  %p542_p11 = por %p105_p7, %p33_p0 }
   0xf   : > { %p546_p12 = por %p111_p8, %p39_p3  ;;  %s137_s26 = sand.u32 1, %s464_s14  }
  0x10   : > { %s654_s24 = scalar_select %p542_p11, 1, 0 }
  0x11   : > { %s655_s25 = scalar_select %p546_p12, 1, 0 }
  0x12   : > { %s316_s27 = sshll.u32 %s468_s15, 7  ;;  %s315_s28 = sshll.u32 %s137_s26, 3 }
  0x13   : > { %s555_s4 = scalar_lea.hbm %s646_s0, %s316_s27  ;;  %s141_s5 = scalar_lea.vmem [#allocation2], %s315_s28 }
  0x14   : > { %s148_s6 = sshll.u32 %s141_s5, 4  ;;  %p559_p13 = pnand %p338_p10, %p531_p5  ;;  %s563_s6 = int_to_ptr.vmem [resolvable:$true] %s148_s6 }
  0x15   : > { %s138_s8 = scalar_lea.sflag [#allocation3], %s137_s26  ;;  %s376_s9 = scalar_lea.hbm %s555_s4, 128 }
  0x16   : > { %p377_p2 = scmp.ne.s32.totalorder %s555_s4, %s376_s9  ;;  %p378_p3 = pneg %p559_p13 }
  0x17   : > { %s381_s17 = scalar_lea.hbm %s646_s0, 256  ;;  %p382_p5 = scmp.lt.s32.totalorder %s555_s4, %s646_s0 }
  0x18   : > { %p379_p4 = pnand %p378_p3, %p377_p2  ;;  %p383_p8 = scmp.lt.s32.totalorder %s381_s17, %s376_s9 }
  0x1a   : > { %p380_p7 = pneg %p379_p4  ;;  %p384_p10 = por %p383_p8, %p382_p5 }
  0x1c   : > { %p385_p9 = pnand %p384_p10, %p380_p7 }
  0x1e   : > { %388 = shalt.err (!%p385_p9)
}
  0x1f   : > { %s389_s22 = scalar_lea.vmem %s563_s6, 128  ;;  %s470_s26 = smov [#allocation2]  }
  0x20   : > { %p390_p0 = scmp.ne.s32.totalorder %s563_s6, %s389_s22  ;;  %s394_s27 = sshll.u32 %s470_s26, 4  ;;  %s395_s27 = int_to_ptr.vmem [resolvable:$false] %s394_s27 }
  0x21   : > { %s396_s28 = scalar_lea.vmem %s395_s27, 256  ;;  %p397_p4 = scmp.lt.s32.totalorder %s563_s6, %s395_s27 }
  0x22   : > { %p392_p1 = pnand %p390_p0, %p378_p3  ;;  %p398_p12 = scmp.lt.s32.totalorder %s396_s28, %s389_s22 }
  0x24   : > { %p393_p2 = pneg %p392_p1  ;;  %p399_p11 = por %p398_p12, %p397_p4 }
  0x26   : > { %p400_p6 = pnand %p399_p11, %p393_p2 }
  0x28   : > { %403 = shalt.err (!%p400_p6)
}
  0x29   : > { %333 = dma.hbm_to_vmem [thread:$0]  (!%p559_p13), %s555_s4, 128, %s563_s6, %s138_s8  }
  0x2a   : > { %p657_p9 = scmp.lt.s32.totalorder %s468_s15, 3  ;;  %p658_p7 = scmp.ge.s32.totalorder %s468_s15, 1 }
  0x2c   : > { %p154_p0 = pnand %p658_p7, %p657_p9 }
  0x2d   : > { %s590_s29 = sand.u32 (!%p154_p0), 1, %s460_s13   ;;  %p659_p6 = scmp.ne.s32.totalorder (!%p154_p0), %s653_s23, 0 }
  0x2e   : > { %157 = sbr.rel (%p154_p0) target bundleno = 255 (0xff), region = 32  ;;  %s318_s30 = sshll.u32 (!%p154_p0), %s590_s29, 3 }
  0x2f   : > { %s160_s5 = scalar_lea.sflag (!%p154_p0), [#allocation3], %s590_s29  ;;  %s163_s7 = scalar_lea.vmem (!%p154_p0), [#allocation2], %s318_s30 }
  0x33   : > { %447 = dma.done.wait (%p659_p6), %s160_s5, 128  }
  0x34   : > { %449 = vsyncadd (%p659_p6), %s160_s5, 4294967168  ;;  %vm187_vm0 = vcmask 261120   ;;  %v186_v0 = vld [vmem:[%s163_s7] sm:$0xff]  ;;  %s323_s9 = sshll.u32 %s513_s16, 7  ;;  %s185_s10 = scalar_lea.vmem [#allocation5], %s318_s30 }
  0x35   : > { %v188_v1 = vsel %vm187_vm0, %v186_v0, 0.0  ;;  %v191_v2 = vmul.f32 %v186_v0, %v186_v0  ;;  %v320_v19 = vld [vmem:[%s647_s1] ss:$0 sm:$0xff]  ;;  %s242_s11 = sshll.u32 %s185_s10, 4  ;;  %s240_s20 = scalar_lea.hbm %s649_s3, %s323_s9  ;;  %s243_s11 = int_to_ptr.vmem [resolvable:$true] %s242_s11 }
  0x36   : > { %189 = vadd.xlane.f32.xlu0 %v188_v1  ;;  %v321_v21 = vld [vmem:[%s648_s2] ss:$0 sm:$0xff]  ;;  %s229_s22 = scalar_lea.sflag [#allocation4], %s590_s29  ;;  %s404_s26 = scalar_lea.vmem %s243_s11, 128 }
  0x37   : > { %v192_v3 = vsel %vm187_vm0, %v191_v2, 0.0  ;;  %p405_p11 = scmp.ne.s32.totalorder %s243_s11, %s404_s26  ;;  %p660_p12 = scmp.ne.s32.totalorder %s654_s24, 0 }
  0x38   : > { %s471_s27 = smov [#allocation5]  }
  0x39   : > { %p406_p13 = pnand %p405_p11, %p660_p12  ;;  %s408_s16 = sshll.u32 %s471_s27, 4  ;;  %s409_s16 = int_to_ptr.vmem [resolvable:$false] %s408_s16 }
  0x3a   : > { %193 = vadd.xlane.f32.xlu0 %v192_v3  ;;  %s410_s28 = scalar_lea.vmem %s409_s16, 256  ;;  %p411_p3 = scmp.lt.s32.totalorder %s243_s11, %s409_s16 }
  0x3b   : > { %p407_p1 = pneg %p406_p13  ;;  %p412_p5 = scmp.lt.s32.totalorder %s410_s28, %s404_s26 }
  0x3d   : > { %p413_p8 = por %p412_p5, %p411_p3 }
  0x3f   : > { %p414_p10 = pnand %p413_p8, %p407_p1 }
  0xbf   : > { %v190_v4 = vpop.xlane.xlu0 %189 }
  0xc0   : > { %v195_v5 = vmul.f32 0.03125, %v190_v4 }
  0xc2   : > { %v196_v6 = vmul.f32 %v195_v5, %v190_v4  ;;  %v209_v17 = vsub.f32 %v186_v0, %v195_v5 }
  0xc3   : > { %v194_v7 = vpop.xlane.xlu0 %193 }
  0xc4   : > { %v197_v8 = vsub.f32 %v194_v7, %v196_v6 }
  0xc6   : > { %v198_v9 = vmul.f32 0.032258064, %v197_v8 }
  0xc8   : > { %v199_v10 = vmax.f32 %v198_v9, 0.0 }
  0xca   : > { %372 = vrsqrt.f32 %v199_v10  ;;  %vm202_vm1 = vcmp.eq.f32.partialorder %v199_v10, inf  ;;  %v205_v13 = vand.u32 2147483648, %v199_v10  ;;  %vm204_vm2 = vcmp.eq.f32.partialorder %v199_v10, 0.0 }
  0xd7   : > { %v373_v11 = vpop.eup %372 }
  0xd8   : > { %v201_v12 = vmul.f32 %v373_v11, %v199_v10 }
  0xda   : > { %v203_v14 = vsel %vm202_vm1, %v199_v10, %v201_v12 }
  0xdb   : > { %v206_v15 = vsel %vm204_vm2, %v205_v13, %v203_v14 }
  0xdc   : > { %v207_v16 = vadd.f32 0.001, %v206_v15 }
  0xde   : > { %374 = vrcp.f32 %v207_v16 }
  0xeb   : > { %v375_v18 = vpop.eup %374 }
  0xec   : > { %v210_v20 = vmul.f32 %v375_v18, %v209_v17 }
  0xee   : > { %v218_v22 = vmul.f32 %v320_v19, %v210_v20 }
  0xf0   : > { %v226_v23 = vadd.f32 %v321_v21, %v218_v22 }
  0xf2   : > { %227 = vst.msk [vmem:[%s185_s10] sm:$0xff] %vm187_vm0, %v226_v23 }
  0xf3   : > { %417 = shalt.err (!%p414_p10)
}
  0xf4   : > { %s418_s30 = scalar_lea.hbm %s240_s20, 128  ;;  %s422_s7 = scalar_lea.hbm %s649_s3, 256 }
  0xf5   : > { %p419_p2 = scmp.ne.s32.totalorder %s240_s20, %s418_s30  ;;  %p423_p7 = scmp.lt.s32.totalorder %s240_s20, %s649_s3 }
  0xf6   : > { %p424_p0 = scmp.lt.s32.totalorder %s422_s7, %s418_s30 }
  0xf7   : > { %p420_p4 = pnand %p419_p2, %p660_p12 }
  0xf8   : > { %p425_p6 = por %p424_p0, %p423_p7 }
  0xf9   : > { %p421_p9 = pneg %p420_p4 }
  0xfb   : > { %p426_p11 = pnand %p425_p6, %p421_p9 }
  0xfd   : > { %429 = shalt.err (!%p426_p11)
}
  0xfe   : > { %328 = dma.vmem_to_hbm [thread:$0]  (%p660_p12), %s243_s11, 128, %s240_s20, %s229_s22  }
  0xff PF: > { %s254_s6 = sand.u32 1, %s456_s12   ;;  %p661_p13 = scmp.ne.s32.totalorder %s655_s25, 0 }
 0x100   : > { %p662_p1 = scmp.ge.s32.totalorder %s468_s15, 2  ;;  %s255_s8 = scalar_lea.sflag [#allocation4], %s254_s6 }
 0x102   : > { %p335_p3 = pnand %p662_p1, %p661_p13 }
 0x104   : > { %p336_p5 = pneg %p335_p3 }
 0x106   : > { %451 = dma.done.wait (%p336_p5), %s255_s8, 128  }
 0x107   : > { %453 = vsyncadd (%p336_p5), %s255_s8, 4294967168  ;;  %p16_p8 = scmp.ge.s32.totalorder %s517_s18, 4   ;;  %s663_s12 = smov %s460_s13 }
 0x108   : > { %s664_s13 = smov %s464_s14  ;;  %s665_s14 = smov %s529_s21 }
 0x109   : > { %s666_s15 = smov %s517_s18  ;;  %18 = sbr.rel (!%p16_p8) target bundleno = 5 (0x5), region = 77 }
 0x10e   :  { %260 = vsyncpa [#allocation3], 1 }
 0x10f   :  { %262 = vsyncpa [#allocation3 + $0x1], 1 }
 0x110   :  { %263 = vsyncpa [#allocation4], 1 }
 0x111   :  { %265 = vsyncpa [#allocation4 + $0x1], 1 }

</bundles_post_ra>
